<compile_context>
chip_gen: v7x
topology: tpu7x:2x2x1
jax: 0.10.0
libtpu: 0.0.40
codegen_flags: <defaults>
</compile_context>

<pallas_src>
import functools
import math

import jax
import jax.numpy as jnp
from jax.experimental import pallas as pl
from jax.experimental.pallas import tpu as pltpu


def _round_up(x: int, m: int) -> int:
    return ((x + m - 1) // m) * m


def _make_kernel(num_linear: int, training: bool, drop_p: float):
    """Kernel over one batch tile.

    refs = ([seed_ref,] x_ref, w0, b0, ..., w_{L-1}, b_{L-1}, out_ref)
    Weights are [in, out]; biases are [1, out]. Dropout follows every hidden ReLU
    except the first one (matching the nn.Sequential above); identity in eval mode.
    """
    # Integer dropout threshold: keep element iff uniform-bits >= p * 2^32.
    threshold = min(int(round(drop_p * (1 << 32))), (1 << 32) - 1)
    inv_keep = 1.0 / (1.0 - drop_p)

    def kernel(*refs):
        idx = 0
        if training:
            seed_ref = refs[idx]
            idx += 1
            # Per-tile independent streams; wrapper passes a fresh seed per call.
            pltpu.prng_seed(seed_ref[0] + pl.program_id(0))
        x_ref = refs[idx]
        idx += 1
        out_ref = refs[-1]

        h = x_ref[...].astype(jnp.float32)
        for l in range(num_linear):
            w_ref = refs[idx + 2 * l]
            b_ref = refs[idx + 2 * l + 1]          # [1, out_features]
            h = jnp.dot(h, w_ref[...], preferred_element_type=jnp.float32)
            h = h + b_ref[...]
            if l < num_linear - 1:
                h = jnp.maximum(h, 0.0)            # ReLU
                if training and l >= 1:            # Dropout(p) after hidden ReLUs 2..depth
                    bits = pltpu.bitcast(
                        pltpu.prng_random_bits(h.shape), jnp.uint32)
                    keep = bits >= jnp.uint32(threshold)
                    h = jnp.where(keep, h * inv_keep, 0.0)

        # dir_params = softplus(logits), numerically stable form (EUP exp/log).
        h = jnp.maximum(h, 0.0) + jnp.log(1.0 + jnp.exp(-jnp.abs(h)))
        out_ref[...] = h.astype(out_ref.dtype)

    return kernel


def init_mlp_params(key, input_dim, width, depth, output_dim, dtype=jnp.float32):
    """nn.Linear-style init (U(-1/sqrt(fan_in), 1/sqrt(fan_in)));
    weights returned already transposed to [in, out]."""
    dims = [input_dim] + [width] * depth + [output_dim]
    params = []
    for i in range(len(dims) - 1):
        fan_in, fan_out = dims[i], dims[i + 1]
        key, kw, kb = jax.random.split(key, 3)
        bound = 1.0 / math.sqrt(fan_in)
        w = jax.random.uniform(kw, (fan_in, fan_out), dtype, minval=-bound, maxval=bound)
        b = jax.random.uniform(kb, (fan_out,), dtype, minval=-bound, maxval=bound)
        params.append((w, b))
    return params


@functools.partial(jax.jit, static_argnames=("input_dim", "flatten_image",
                                             "training", "block_rows", "drop_p"))
def mlp_drop_dirichlet_forward(x, params, seed=0, *, input_dim,
                               flatten_image=True, training=False,
                               block_rows=1024, drop_p=0.5):
    if flatten_image:
        x = x.reshape(-1, input_dim)
    batch = x.shape[0]
    num_linear = len(params)
    out_dim = params[-1][0].shape[1]
    out_pad = max(128, _round_up(out_dim, 128))
    itemsize = jnp.dtype(x.dtype).itemsize

    # Lane-pad the last Linear so the final store / writeback DMA is full-lane.
    w_last, b_last = params[-1]
    w_last = jnp.pad(w_last, ((0, 0), (0, out_pad - out_dim)))
    b_last = jnp.pad(b_last, ((0, out_pad - out_dim),))
    padded = list(params[:-1]) + [(w_last, b_last)]

    # Batch tile: target `block_rows` rows; whole batch in one tile if smaller.
    tm = batch if batch <= block_rows else block_rows
    grid = (pl.cdiv(batch, tm),)

    flat_args = []
    in_specs = []
    if training:
        flat_args.append(jnp.asarray(seed, jnp.int32).reshape(1))
        in_specs.append(pl.BlockSpec(memory_space=pltpu.MemorySpace.SMEM))
    flat_args.append(x)
    in_specs.append(pl.BlockSpec((tm, input_dim), lambda i: (i, 0)))
    param_bytes = 0
    for w, b in padded:
        b2 = b.reshape(1, -1)                      # 2-D bias for TPU lane layout
        flat_args += [w, b2]
        in_specs += [pl.BlockSpec(w.shape, lambda i: (0, 0)),
                     pl.BlockSpec(b2.shape, lambda i: (0, 0))]
        param_bytes += (math.prod(w.shape) + math.prod(b2.shape)) \
            * jnp.dtype(w.dtype).itemsize

    out_specs = pl.BlockSpec((tm, out_pad), lambda i: (i, 0))
    out_shape = jax.ShapeDtypeStruct((batch, out_pad), x.dtype)

    # Scoped-VMEM budget: double-buffered x/out tiles + resident params + headroom.
    vmem_bytes = 2 * tm * (input_dim + out_pad) * itemsize + 2 * param_bytes
    vmem_limit = min(max(int(vmem_bytes * 1.5) + (4 << 20), 32 << 20), 64 << 20)

    # Advisory cost hint so XLA can overlap the (mem-bound) kernel with neighbors.
    dims = [input_dim] + [w.shape[1] for w, _ in padded]
    flops = 2 * batch * sum(dims[i] * dims[i + 1] for i in range(len(dims) - 1))
    transcendentals = 2 * batch * out_pad          # exp + log of the softplus
    bytes_accessed = batch * (input_dim + out_pad) * itemsize + param_bytes

    kernel = _make_kernel(num_linear, training, drop_p)
    out = pl.pallas_call(
        kernel,
        grid=grid,
        in_specs=in_specs,
        out_specs=out_specs,
        out_shape=out_shape,
        compiler_params=pltpu.CompilerParams(
            dimension_semantics=("parallel",),
            vmem_limit_bytes=vmem_limit),
        cost_estimate=pl.CostEstimate(
            flops=flops, transcendentals=transcendentals,
            bytes_accessed=bytes_accessed),
    )(*flat_args)
    return out[:, :out_dim]


def mlp_drop_dirichlet_reference(x, params, *, input_dim, flatten_image=True):
    """Pure-JAX eval-mode reference (dropout = identity)."""
    if flatten_image:
        x = x.reshape(-1, input_dim)
    h = x.astype(jnp.float32)
    for i, (w, b) in enumerate(params):
        h = h @ w.astype(jnp.float32) + b.astype(jnp.float32)
        if i < len(params) - 1:
            h = jnp.maximum(h, 0.0)
    return jax.nn.softplus(h).astype(x.dtype)


if __name__ == "__main__":
    # Module config: flatten_image=True, NCHW image batch.
    batch, C, H, W = 2, 4, 16, 16
    input_dim = C * H * W            # 1024
    width, depth, output_dim = 32, 3, 10

    key = jax.random.PRNGKey(0)
    kx, kp, kx2 = jax.random.split(key, 3)
    params = init_mlp_params(kp, input_dim, width, depth, output_dim)

    # Eval-mode forward: whole (tiny) batch in a single tile.
    x = jax.random.normal(kx, (batch, C, H, W), jnp.float32)
    out = mlp_drop_dirichlet_forward(x, params, input_dim=input_dim,
                                     flatten_image=True, training=False)
    out = jax.block_until_ready(out)
    ref = mlp_drop_dirichlet_reference(x, params, input_dim=input_dim)
    assert out.shape == (batch, output_dim), out.shape
    assert bool(jnp.all(out > 0)), "softplus output must be positive"
    assert jnp.allclose(out, ref, atol=1e-4, rtol=1e-4), "mismatch vs reference"

    # Exercise the batch-tiled grid path (multiple tiles + ragged last tile).
    batch2 = 40
    x2 = jax.random.normal(kx2, (batch2, C, H, W), jnp.float32)
    out2 = mlp_drop_dirichlet_forward(x2, params, input_dim=input_dim,
                                      flatten_image=True, training=False,
                                      block_rows=16)
    out2 = jax.block_until_ready(out2)
    ref2 = mlp_drop_dirichlet_reference(x2, params, input_dim=input_dim)
    assert out2.shape == (batch2, output_dim), out2.shape
    assert jnp.allclose(out2, ref2, atol=1e-4, rtol=1e-4), "tiled mismatch vs reference"

    print("KERNEL_OK")
</pallas_src>

<mosaic_0001>
module attributes {stable_mosaic.version = 11 : i64} {
  func.func @kernel(%arg0: i32, %arg1: memref<2x1024xf32, #tpu.memory_space<vmem>>, %arg2: memref<1024x32xf32, #tpu.memory_space<vmem>>, %arg3: memref<1x32xf32, #tpu.memory_space<vmem>>, %arg4: memref<32x32xf32, #tpu.memory_space<vmem>>, %arg5: memref<1x32xf32, #tpu.memory_space<vmem>>, %arg6: memref<32x32xf32, #tpu.memory_space<vmem>>, %arg7: memref<1x32xf32, #tpu.memory_space<vmem>>, %arg8: memref<32x128xf32, #tpu.memory_space<vmem>>, %arg9: memref<1x128xf32, #tpu.memory_space<vmem>>, %arg10: memref<2x128xf32, #tpu.memory_space<vmem>>) attributes {dimension_semantics = [#tpu.dimension_semantics<parallel>], iteration_bounds = array<i64: 1>, scalar_prefetch = 0 : i64, scratch_operands = 0 : i64, tpu.core_type = #tpu.core_type<tc>, window_params = [{transform_indices = @transform_0, window_bounds = array<i64: 2, 1024>}, {pipeline_mode = #tpu.pipeline_mode<synchronous>, transform_indices = @transform_1, window_bounds = array<i64: 1024, 32>}, {pipeline_mode = #tpu.pipeline_mode<synchronous>, transform_indices = @transform_2, window_bounds = array<i64: 1, 32>}, {pipeline_mode = #tpu.pipeline_mode<synchronous>, transform_indices = @transform_3, window_bounds = array<i64: 32, 32>}, {pipeline_mode = #tpu.pipeline_mode<synchronous>, transform_indices = @transform_4, window_bounds = array<i64: 1, 32>}, {pipeline_mode = #tpu.pipeline_mode<synchronous>, transform_indices = @transform_5, window_bounds = array<i64: 32, 32>}, {pipeline_mode = #tpu.pipeline_mode<synchronous>, transform_indices = @transform_6, window_bounds = array<i64: 1, 32>}, {pipeline_mode = #tpu.pipeline_mode<synchronous>, transform_indices = @transform_7, window_bounds = array<i64: 32, 128>}, {pipeline_mode = #tpu.pipeline_mode<synchronous>, transform_indices = @transform_8, window_bounds = array<i64: 1, 128>}, {transform_indices = @transform_9, window_bounds = array<i64: 2, 128>}]} {
    %c0 = arith.constant 0 : index
    %c0_0 = arith.constant 0 : index
    %0 = vector.load %arg1[%c0, %c0_0] : memref<2x1024xf32, #tpu.memory_space<vmem>>, vector<2x1024xf32>
    %c0_1 = arith.constant 0 : index
    %c0_2 = arith.constant 0 : index
    %1 = vector.load %arg2[%c0_1, %c0_2] : memref<1024x32xf32, #tpu.memory_space<vmem>>, vector<1024x32xf32>
    %cst = arith.constant dense<0.000000e+00> : vector<2x32xf32>
    %2 = tpu.matmul %0, %1, %cst {dimension_numbers = #tpu.dot_dimension_numbers<[1], [0], [0], [1], [0, 0, 1, 1], [], []>} : vector<2x1024xf32>, vector<1024x32xf32>, vector<2x32xf32> -> vector<2x32xf32>
    %c0_3 = arith.constant 0 : index
    %c0_4 = arith.constant 0 : index
    %3 = vector.load %arg3[%c0_3, %c0_4] : memref<1x32xf32, #tpu.memory_space<vmem>>, vector<1x32xf32>
    %4 = vector.broadcast %3 : vector<1x32xf32> to vector<2x32xf32>
    %5 = arith.addf %2, %4 : vector<2x32xf32>
    %cst_5 = arith.constant 0.000000e+00 : f32
    %6 = vector.broadcast %cst_5 : f32 to vector<2x32xf32>
    %7 = arith.maximumf %5, %6 : vector<2x32xf32>
    %c0_6 = arith.constant 0 : index
    %c0_7 = arith.constant 0 : index
    %8 = vector.load %arg4[%c0_6, %c0_7] : memref<32x32xf32, #tpu.memory_space<vmem>>, vector<32x32xf32>
    %cst_8 = arith.constant dense<0.000000e+00> : vector<2x32xf32>
    %9 = tpu.matmul %7, %8, %cst_8 {dimension_numbers = #tpu.dot_dimension_numbers<[1], [0], [0], [1], [0, 0, 1, 1], [], []>} : vector<2x32xf32>, vector<32x32xf32>, vector<2x32xf32> -> vector<2x32xf32>
    %c0_9 = arith.constant 0 : index
    %c0_10 = arith.constant 0 : index
    %10 = vector.load %arg5[%c0_9, %c0_10] : memref<1x32xf32, #tpu.memory_space<vmem>>, vector<1x32xf32>
    %11 = vector.broadcast %10 : vector<1x32xf32> to vector<2x32xf32>
    %12 = arith.addf %9, %11 : vector<2x32xf32>
    %cst_11 = arith.constant 0.000000e+00 : f32
    %13 = vector.broadcast %cst_11 : f32 to vector<2x32xf32>
    %14 = arith.maximumf %12, %13 : vector<2x32xf32>
    %c0_12 = arith.constant 0 : index
    %c0_13 = arith.constant 0 : index
    %15 = vector.load %arg6[%c0_12, %c0_13] : memref<32x32xf32, #tpu.memory_space<vmem>>, vector<32x32xf32>
    %cst_14 = arith.constant dense<0.000000e+00> : vector<2x32xf32>
    %16 = tpu.matmul %14, %15, %cst_14 {dimension_numbers = #tpu.dot_dimension_numbers<[1], [0], [0], [1], [0, 0, 1, 1], [], []>} : vector<2x32xf32>, vector<32x32xf32>, vector<2x32xf32> -> vector<2x32xf32>
    %c0_15 = arith.constant 0 : index
    %c0_16 = arith.constant 0 : index
    %17 = vector.load %arg7[%c0_15, %c0_16] : memref<1x32xf32, #tpu.memory_space<vmem>>, vector<1x32xf32>
    %18 = vector.broadcast %17 : vector<1x32xf32> to vector<2x32xf32>
    %19 = arith.addf %16, %18 : vector<2x32xf32>
    %cst_17 = arith.constant 0.000000e+00 : f32
    %20 = vector.broadcast %cst_17 : f32 to vector<2x32xf32>
    %21 = arith.maximumf %19, %20 : vector<2x32xf32>
    %c0_18 = arith.constant 0 : index
    %c0_19 = arith.constant 0 : index
    %22 = vector.load %arg8[%c0_18, %c0_19] : memref<32x128xf32, #tpu.memory_space<vmem>>, vector<32x128xf32>
    %cst_20 = arith.constant dense<0.000000e+00> : vector<2x128xf32>
    %23 = tpu.matmul %21, %22, %cst_20 {dimension_numbers = #tpu.dot_dimension_numbers<[1], [0], [0], [1], [0, 0, 1, 1], [], []>} : vector<2x32xf32>, vector<32x128xf32>, vector<2x128xf32> -> vector<2x128xf32>
    %c0_21 = arith.constant 0 : index
    %c0_22 = arith.constant 0 : index
    %24 = vector.load %arg9[%c0_21, %c0_22] : memref<1x128xf32, #tpu.memory_space<vmem>>, vector<1x128xf32>
    %25 = vector.broadcast %24 : vector<1x128xf32> to vector<2x128xf32>
    %26 = arith.addf %23, %25 : vector<2x128xf32>
    %cst_23 = arith.constant 0.000000e+00 : f32
    %27 = vector.broadcast %cst_23 : f32 to vector<2x128xf32>
    %28 = arith.maximumf %26, %27 : vector<2x128xf32>
    %29 = math.absf %26 : vector<2x128xf32>
    %cst_24 = arith.constant 0.000000e+00 : f32
    %30 = vector.broadcast %cst_24 : f32 to vector<2x128xf32>
    %31 = arith.subf %30, %29 : vector<2x128xf32>
    %32 = math.exp %31 : vector<2x128xf32>
    %cst_25 = arith.constant 1.000000e+00 : f32
    %33 = vector.broadcast %cst_25 : f32 to vector<2x128xf32>
    %34 = arith.addf %33, %32 : vector<2x128xf32>
    %35 = math.log %34 : vector<2x128xf32>
    %36 = arith.addf %28, %35 : vector<2x128xf32>
    %c0_26 = arith.constant 0 : index
    %c0_27 = arith.constant 0 : index
    %37 = vector.load %arg10[%c0_26, %c0_27] : memref<2x128xf32, #tpu.memory_space<vmem>>, vector<2x128xf32>
    tpu.vector_store %arg10[%c0_26, %c0_27], %36 {strides = array<i32>} : memref<2x128xf32, #tpu.memory_space<vmem>>, vector<2x128xf32>,
    return
  }
  func.func @transform_0(%arg0: i32) -> (i32, i32) {
    %c0_i32 = arith.constant 0 : i32
    %c0_i32_0 = arith.constant 0 : i32
    return %arg0, %c0_i32 : i32, i32
  }
  func.func @transform_1(%arg0: i32) -> (i32, i32) {
    %c0_i32 = arith.constant 0 : i32
    %c0_i32_0 = arith.constant 0 : i32
    %c0_i32_1 = arith.constant 0 : i32
    return %c0_i32, %c0_i32_0 : i32, i32
  }
  func.func @transform_2(%arg0: i32) -> (i32, i32) {
    %c0_i32 = arith.constant 0 : i32
    %c0_i32_0 = arith.constant 0 : i32
    %c0_i32_1 = arith.constant 0 : i32
    return %c0_i32, %c0_i32_0 : i32, i32
  }
  func.func @transform_3(%arg0: i32) -> (i32, i32) {
    %c0_i32 = arith.constant 0 : i32
    %c0_i32_0 = arith.constant 0 : i32
    %c0_i32_1 = arith.constant 0 : i32
    return %c0_i32, %c0_i32_0 : i32, i32
  }
  func.func @transform_4(%arg0: i32) -> (i32, i32) {
    %c0_i32 = arith.constant 0 : i32
    %c0_i32_0 = arith.constant 0 : i32
    %c0_i32_1 = arith.constant 0 : i32
    return %c0_i32, %c0_i32_0 : i32, i32
  }
  func.func @transform_5(%arg0: i32) -> (i32, i32) {
    %c0_i32 = arith.constant 0 : i32
    %c0_i32_0 = arith.constant 0 : i32
    %c0_i32_1 = arith.constant 0 : i32
    return %c0_i32, %c0_i32_0 : i32, i32
  }
  func.func @transform_6(%arg0: i32) -> (i32, i32) {
    %c0_i32 = arith.constant 0 : i32
    %c0_i32_0 = arith.constant 0 : i32
    %c0_i32_1 = arith.constant 0 : i32
    return %c0_i32, %c0_i32_0 : i32, i32
  }
  func.func @transform_7(%arg0: i32) -> (i32, i32) {
    %c0_i32 = arith.constant 0 : i32
    %c0_i32_0 = arith.constant 0 : i32
    %c0_i32_1 = arith.constant 0 : i32
    return %c0_i32, %c0_i32_0 : i32, i32
  }
  func.func @transform_8(%arg0: i32) -> (i32, i32) {
    %c0_i32 = arith.constant 0 : i32
    %c0_i32_0 = arith.constant 0 : i32
    %c0_i32_1 = arith.constant 0 : i32
    return %c0_i32, %c0_i32_0 : i32, i32
  }
  func.func @transform_9(%arg0: i32) -> (i32, i32) {
    %c0_i32 = arith.constant 0 : i32
    %c0_i32_0 = arith.constant 0 : i32
    return %arg0, %c0_i32 : i32, i32
  }
}

</mosaic_0001>

<bundles_post_ra>
// kernel: mlp_drop_dirichlet_forward.1
= control target key start
LH: loop header
LB: loop body
LE: loop exit
PB: predicated region body
PF: predicated region fallthrough
CT: control target
= control target key end

     0   :  { %v1150_v47 = vmov 1983009808   ;;  %v176_v49 = vlaneseq  ;;  %s1672_s0 = inlined_call_operand.vmem [shape: f32[2,1024], index: 0, kind: input, shape index: {}]   ;;  %s1673_s1 = inlined_call_operand.vmem [shape: f32[1024,32], index: 1, kind: input, shape index: {}]   ;;  %s1674_s2 = inlined_call_operand.vmem [shape: f32[1,32], index: 2, kind: input, shape index: {}]   ;;  %s1675_s3 = inlined_call_operand.vmem [shape: f32[32,32], index: 3, kind: input, shape index: {}]   ;;  %s1676_s4 = inlined_call_operand.vmem [shape: f32[1,32], index: 4, kind: input, shape index: {}]   ;;  %s1677_s5 = inlined_call_operand.vmem [shape: f32[32,32], index: 5, kind: input, shape index: {}]   ;;  %s1678_s6 = inlined_call_operand.vmem [shape: f32[1,32], index: 6, kind: input, shape index: {}]   ;;  %s1679_s7 = inlined_call_operand.vmem [shape: f32[32,128], index: 7, kind: input, shape index: {}]   ;;  %s1680_s8 = inlined_call_operand.vmem [shape: f32[1,128], index: 8, kind: input, shape index: {}]   ;;  %s1681_s9 = inlined_call_operand.hbm [shape: f32[2,128], index: 9, kind: output, shape index: {}]  }
   0x1   :  { %v51_v0 = vld [vmem:[%s1673_s1 + $0x80] sm:$0xff]  ;;  %v52_v1 = vld [vmem:[%s1673_s1 + $0x88] sm:$0xff]  ;;  %v53_v11 = vld [vmem:[%s1673_s1 + $0x90] sm:$0xff]  ;;  %v174_v48 = vunpack.c.l.s4 %v1150_v47 }
   0x2   :  { %v35_v2 = vld [vmem:[%s1673_s1] sm:$0xff]  ;;  %v969_v3 = vpack.c.bf16 %v52_v1, %v51_v0  ;;  %v36_v4 = vld [vmem:[%s1673_s1 + $0x8] sm:$0xff]  ;;  %v54_v13 = vld [vmem:[%s1673_s1 + $0x98] sm:$0xff]  ;;  %v177_v0 = vshrl.u32 %v176_v49, 7 }
   0x3   :  { %v83_v5 = vld [vmem:[%s1673_s1 + $0x180] sm:$0xff]  ;;  %v84_v6 = vld [vmem:[%s1673_s1 + $0x188] sm:$0xff]  ;;  %v971_v7 = vpack.c.bf16 %v36_v4, %v35_v2  ;;  %v37_v14 = vld [vmem:[%s1673_s1 + $0x10] sm:$0xff]  ;;  %v973_v16 = vpack.c.bf16 %v54_v13, %v53_v11  ;;  %v175_v63 = vunpack.c.0.s8 %v174_v48 }
   0x4   :  { %v1001_v8 = vpack.c.bf16 %v84_v6, %v83_v5  ;;  %v67_v9 = vld [vmem:[%s1673_s1 + $0x100] sm:$0xff]  ;;  %v68_v10 = vld [vmem:[%s1673_s1 + $0x108] sm:$0xff]  ;;  %970 = vmatprep.subr.bf16.mxu0 %v969_v3  ;;  %v38_v15 = vld [vmem:[%s1673_s1 + $0x18] sm:$0xff] }
   0x5   :  { %v1003_v12 = vpack.c.bf16 %v68_v10, %v67_v9  ;;  %972 = vmatpush3.bf16.msra.mxu0 %v971_v7  ;;  %v975_v17 = vpack.c.bf16 %v38_v15, %v37_v14  ;;  %v85_v18 = vld [vmem:[%s1673_s1 + $0x190] sm:$0xff]  ;;  %v86_v19 = vld [vmem:[%s1673_s1 + $0x198] sm:$0xff]  ;;  %v55_v23 = vld [vmem:[%s1673_s1 + $0xa0] sm:$0xff]  ;;  %v1355_v13 = vsub.s32 %v175_v63, %v177_v0 }
   0x6   :  { %1002 = vmatprep.subr.bf16.mxu1 %v1001_v8  ;;  %v69_v20 = vld [vmem:[%s1673_s1 + $0x110] sm:$0xff]  ;;  %v1005_v21 = vpack.c.bf16 %v86_v19, %v85_v18  ;;  %v70_v22 = vld [vmem:[%s1673_s1 + $0x118] sm:$0xff]  ;;  %v56_v24 = vld [vmem:[%s1673_s1 + $0xa8] sm:$0xff]  ;;  %974 = vmatprep.subr.bf16.mxu0 %v973_v16 }
   0x7   :  { %1004 = vmatpush3.bf16.msra.mxu1 %v1003_v12  ;;  %v1007_v25 = vpack.c.bf16 %v70_v22, %v69_v20  ;;  %v977_v26 = vpack.c.bf16 %v56_v24, %v55_v23  ;;  %v39_v27 = vld [vmem:[%s1673_s1 + $0x20] sm:$0xff]  ;;  %v40_v28 = vld [vmem:[%s1673_s1 + $0x28] sm:$0xff]  ;;  %v57_v35 = vld [vmem:[%s1673_s1 + $0xb0] sm:$0xff] }
   0x8   :  { %v87_v29 = vld [vmem:[%s1673_s1 + $0x1a0] sm:$0xff]  ;;  %1006 = vmatprep.subr.bf16.mxu1 %v1005_v21  ;;  %v88_v30 = vld [vmem:[%s1673_s1 + $0x1a8] sm:$0xff]  ;;  %v979_v33 = vpack.c.bf16 %v40_v28, %v39_v27  ;;  %v58_v36 = vld [vmem:[%s1673_s1 + $0xb8] sm:$0xff] }
   0x9   :  { %v71_v31 = vld [vmem:[%s1673_s1 + $0x120] sm:$0xff]  ;;  %v72_v32 = vld [vmem:[%s1673_s1 + $0x128] sm:$0xff]  ;;  %976 = vmatpush3.bf16.msra.mxu0 %v975_v17  ;;  %v1009_v34 = vpack.c.bf16 %v88_v30, %v87_v29  ;;  %v41_v37 = vld [vmem:[%s1673_s1 + $0x30] sm:$0xff]  ;;  %v981_v39 = vpack.c.bf16 %v58_v36, %v57_v35 }
   0xa   :  { %978 = vmatprep.subr.bf16.mxu0 %v977_v26  ;;  %v1011_v38 = vpack.c.bf16 %v72_v32, %v71_v31  ;;  %v42_v40 = vld [vmem:[%s1673_s1 + $0x38] sm:$0xff]  ;;  %v89_v41 = vld [vmem:[%s1673_s1 + $0x1b0] sm:$0xff]  ;;  %v59_v46 = vld [vmem:[%s1673_s1 + $0xc0] sm:$0xff] }
   0xb   :  { %1008 = vmatpush3.bf16.msra.mxu1 %v1007_v25  ;;  %v90_v42 = vld [vmem:[%s1673_s1 + $0x1b8] sm:$0xff]  ;;  %v73_v44 = vld [vmem:[%s1673_s1 + $0x130] sm:$0xff]  ;;  %v60_v50 = vld [vmem:[%s1673_s1 + $0xc8] sm:$0xff]  ;;  %v983_v51 = vpack.c.bf16 %v42_v40, %v41_v37 }
   0xc   :  { %1010 = vmatprep.subr.bf16.mxu1 %v1009_v34  ;;  %v1013_v43 = vpack.c.bf16 %v90_v42, %v89_v41  ;;  %v74_v45 = vld [vmem:[%s1673_s1 + $0x138] sm:$0xff]  ;;  %v91_v52 = vld [vmem:[%s1673_s1 + $0x1c0] sm:$0xff]  ;;  %v92_v53 = vld [vmem:[%s1673_s1 + $0x1c8] sm:$0xff]  ;;  %v985_v55 = vpack.c.bf16 %v60_v50, %v59_v46 }
   0xd   :  { %980 = vmatpush3.bf16.msra.mxu0 %v979_v33  ;;  %v1015_v54 = vpack.c.bf16 %v74_v45, %v73_v44  ;;  %v43_v56 = vld [vmem:[%s1673_s1 + $0x40] sm:$0xff]  ;;  %v44_v57 = vld [vmem:[%s1673_s1 + $0x48] sm:$0xff]  ;;  %v1017_v59 = vpack.c.bf16 %v92_v53, %v91_v52  ;;  %v61_v61 = vld [vmem:[%s1673_s1 + $0xd0] sm:$0xff] }
   0xe   :  { %982 = vmatprep.subr.bf16.mxu0 %v981_v39  ;;  %v75_v58 = vld [vmem:[%s1673_s1 + $0x140] sm:$0xff]  ;;  %v76_v60 = vld [vmem:[%s1673_s1 + $0x148] sm:$0xff]  ;;  %v62_v62 = vld [vmem:[%s1673_s1 + $0xd8] sm:$0xff]  ;;  %v987_v3 = vpack.c.bf16 %v44_v57, %v43_v56 }
   0xf   :  { %1012 = vmatpush3.bf16.msra.mxu1 %v1011_v38  ;;  %v93_v1 = vld [vmem:[%s1673_s1 + $0x1d0] sm:$0xff]  ;;  %v94_v2 = vld [vmem:[%s1673_s1 + $0x1d8] sm:$0xff]  ;;  %v1019_v4 = vpack.c.bf16 %v76_v60, %v75_v58  ;;  %v989_v5 = vpack.c.bf16 %v62_v62, %v61_v61  ;;  %v63_v11 = vld [vmem:[%s1673_s1 + $0xe0] sm:$0xff] }
  0x10   :  { %1014 = vmatprep.subr.bf16.mxu1 %v1013_v43  ;;  %v45_v6 = vld [vmem:[%s1673_s1 + $0x50] sm:$0xff]  ;;  %v46_v7 = vld [vmem:[%s1673_s1 + $0x58] sm:$0xff]  ;;  %v1021_v9 = vpack.c.bf16 %v94_v2, %v93_v1  ;;  %v64_v12 = vld [vmem:[%s1673_s1 + $0xe8] sm:$0xff] }
  0x11   :  { %984 = vmatpush3.bf16.msra.mxu0 %v983_v51  ;;  %v77_v8 = vld [vmem:[%s1673_s1 + $0x150] sm:$0xff]  ;;  %v78_v10 = vld [vmem:[%s1673_s1 + $0x158] sm:$0xff]  ;;  %v95_v14 = vld [vmem:[%s1673_s1 + $0x1e0] sm:$0xff]  ;;  %v991_v16 = vpack.c.bf16 %v46_v7, %v45_v6  ;;  %v993_v19 = vpack.c.bf16 %v64_v12, %v63_v11 }
  0x12   :  { %986 = vmatprep.subr.bf16.mxu0 %v985_v55  ;;  %v96_v15 = vld [vmem:[%s1673_s1 + $0x1e8] sm:$0xff]  ;;  %v47_v17 = vld [vmem:[%s1673_s1 + $0x60] sm:$0xff]  ;;  %v1023_v18 = vpack.c.bf16 %v78_v10, %v77_v8  ;;  %v65_v25 = vld [vmem:[%s1673_s1 + $0xf0] sm:$0xff] }
  0x13   :  { %1016 = vmatpush3.bf16.msra.mxu1 %v1015_v54  ;;  %v48_v20 = vld [vmem:[%s1673_s1 + $0x68] sm:$0xff]  ;;  %v79_v21 = vld [vmem:[%s1673_s1 + $0x160] sm:$0xff]  ;;  %v1025_v23 = vpack.c.bf16 %v96_v15, %v95_v14  ;;  %v66_v26 = vld [vmem:[%s1673_s1 + $0xf8] sm:$0xff] }
  0x14   :  { %1018 = vmatprep.subr.bf16.mxu1 %v1017_v59  ;;  %v33_v22 = vld [vmem:[%s1672_s0] sm:$0xff]  ;;  %v80_v24 = vld [vmem:[%s1673_s1 + $0x168] sm:$0xff]  ;;  %v97_v29 = vld [vmem:[%s1673_s1 + $0x1f0] sm:$0xff]  ;;  %v995_v31 = vpack.c.bf16 %v48_v20, %v47_v17  ;;  %v997_v35 = vpack.c.bf16 %v66_v26, %v65_v25 }
  0x15   :  { %988 = vmatpush3.bf16.msra.mxu0 %v987_v3  ;;  %v179_v27 = vrot.slane %v33_v22, %v1355_v13  ;;  %v172_v28 = vcombine.high %v33_v22, %v33_v22  ;;  %v98_v30 = vld [vmem:[%s1673_s1 + $0x1f8] sm:$0xff]  ;;  %v1027_v34 = vpack.c.bf16 %v80_v24, %v79_v21  ;;  %v49_v36 = vld [vmem:[%s1673_s1 + $0x70] sm:$0xff]  ;;  %v115_v41 = vld [vmem:[%s1673_s1 + $0x280] sm:$0xff] }
  0x16   :  { %990 = vmatprep.subr.bf16.mxu0 %v989_v5  ;;  %v50_v37 = vld [vmem:[%s1673_s1 + $0x78] sm:$0xff]  ;;  %v81_v38 = vld [vmem:[%s1673_s1 + $0x170] sm:$0xff]  ;;  %v1029_v39 = vpack.c.bf16 %v98_v30, %v97_v29  ;;  %v116_v42 = vld [vmem:[%s1673_s1 + $0x288] sm:$0xff] }
  0x17   :  { %1020 = vmatpush3.bf16.msra.mxu1 %v1019_v4  ;;  %v187_v32 = vcombine.high %v179_v27, %v179_v27  ;;  %v186_v33 = vrot.slane %v172_v28, %v1355_v13  ;;  %v82_v40 = vld [vmem:[%s1673_s1 + $0x178] sm:$0xff]  ;;  %v147_v44 = vld [vmem:[%s1673_s1 + $0x380] sm:$0xff]  ;;  %v148_v45 = vld [vmem:[%s1673_s1 + $0x388] sm:$0xff]  ;;  %v999_v46 = vpack.c.bf16 %v50_v37, %v49_v36  ;;  %v1033_v48 = vpack.c.bf16 %v116_v42, %v115_v41 }
  0x18   :  { %1022 = vmatprep.subr.bf16.mxu1 %v1021_v9  ;;  %v1031_v47 = vpack.c.bf16 %v82_v40, %v81_v38  ;;  %v99_v49 = vld [vmem:[%s1673_s1 + $0x200] sm:$0xff]  ;;  %v100_v50 = vld [vmem:[%s1673_s1 + $0x208] sm:$0xff]  ;;  %v1065_v52 = vpack.c.bf16 %v148_v45, %v147_v44  ;;  %v117_v54 = vld [vmem:[%s1673_s1 + $0x290] sm:$0xff] }
  0x19   :  { %992 = vmatpush3.bf16.msra.mxu0 %v991_v16  ;;  %278 = vmatprep.mubr.f32.mxu0 %v187_v32  ;;  %v188_v43 = vcombine.high %v186_v33, %v186_v33  ;;  %v131_v51 = vld [vmem:[%s1673_s1 + $0x300] sm:$0xff]  ;;  %v132_v53 = vld [vmem:[%s1673_s1 + $0x308] sm:$0xff]  ;;  %v118_v55 = vld [vmem:[%s1673_s1 + $0x298] sm:$0xff]  ;;  %v1035_v58 = vpack.c.bf16 %v100_v50, %v99_v49 }
  0x1a   :  { %994 = vmatprep.subr.bf16.mxu0 %v993_v19  ;;  %v149_v56 = vld [vmem:[%s1673_s1 + $0x390] sm:$0xff]  ;;  %v150_v57 = vld [vmem:[%s1673_s1 + $0x398] sm:$0xff]  ;;  %v1067_v59 = vpack.c.bf16 %v132_v53, %v131_v51  ;;  %v1037_v60 = vpack.c.bf16 %v118_v55, %v117_v54  ;;  %v119_v2 = vld [vmem:[%s1673_s1 + $0x2a0] sm:$0xff] }
  0x1b   :  { %1024 = vmatpush3.bf16.msra.mxu1 %v1023_v18  ;;  %348 = vmatprep.mubr.f32.mxu1 %v188_v43  ;;  %v101_v61 = vld [vmem:[%s1673_s1 + $0x210] sm:$0xff]  ;;  %v102_v62 = vld [vmem:[%s1673_s1 + $0x218] sm:$0xff]  ;;  %v1069_v0 = vpack.c.bf16 %v150_v57, %v149_v56  ;;  %v120_v3 = vld [vmem:[%s1673_s1 + $0x2a8] sm:$0xff] }
  0x1c   :  { %1026 = vmatprep.subr.bf16.mxu1 %v1025_v23  ;;  %v133_v63 = vld [vmem:[%s1673_s1 + $0x310] sm:$0xff]  ;;  %v134_v1 = vld [vmem:[%s1673_s1 + $0x318] sm:$0xff]  ;;  %v151_v4 = vld [vmem:[%s1673_s1 + $0x3a0] sm:$0xff]  ;;  %v1039_v6 = vpack.c.bf16 %v102_v62, %v101_v61  ;;  %v1041_v8 = vpack.c.bf16 %v120_v3, %v119_v2 }
  0x1d   :  { %996 = vmatpush3.bf16.msra.mxu0 %v995_v31  ;;  %v152_v5 = vld [vmem:[%s1673_s1 + $0x3a8] sm:$0xff]  ;;  %v1071_v7 = vpack.c.bf16 %v134_v1, %v133_v63  ;;  %v103_v9 = vld [vmem:[%s1673_s1 + $0x220] sm:$0xff]  ;;  %v121_v15 = vld [vmem:[%s1673_s1 + $0x2b0] sm:$0xff] }
  0x1e   :  { %998 = vmatprep.subr.bf16.mxu0 %v997_v35  ;;  %v104_v10 = vld [vmem:[%s1673_s1 + $0x228] sm:$0xff]  ;;  %v135_v11 = vld [vmem:[%s1673_s1 + $0x320] sm:$0xff]  ;;  %v1073_v12 = vpack.c.bf16 %v152_v5, %v151_v4  ;;  %v122_v16 = vld [vmem:[%s1673_s1 + $0x2b8] sm:$0xff] }
  0x1f   :  { %1028 = vmatpush3.bf16.msra.mxu1 %v1027_v34  ;;  %v136_v14 = vld [vmem:[%s1673_s1 + $0x328] sm:$0xff]  ;;  %v153_v17 = vld [vmem:[%s1673_s1 + $0x3b0] sm:$0xff]  ;;  %v154_v18 = vld [vmem:[%s1673_s1 + $0x3b8] sm:$0xff]  ;;  %v1043_v19 = vpack.c.bf16 %v104_v10, %v103_v9  ;;  %v1045_v22 = vpack.c.bf16 %v122_v16, %v121_v15 }
  0x20   :  { %1030 = vmatprep.subr.bf16.mxu1 %v1029_v39  ;;  %v105_v20 = vld [vmem:[%s1673_s1 + $0x230] sm:$0xff]  ;;  %v1075_v21 = vpack.c.bf16 %v136_v14, %v135_v11  ;;  %v106_v23 = vld [vmem:[%s1673_s1 + $0x238] sm:$0xff]  ;;  %v1077_v26 = vpack.c.bf16 %v154_v18, %v153_v17  ;;  %v124_v28 = vld [vmem:[%s1673_s1 + $0x2c8] sm:$0xff] }
  0x21   :  { %1000 = vmatpush3.bf16.msra.mxu0 %v999_v46  ;;  %v137_v24 = vld [vmem:[%s1673_s1 + $0x330] sm:$0xff]  ;;  %v138_v25 = vld [vmem:[%s1673_s1 + $0x338] sm:$0xff]  ;;  %v155_v29 = vld [vmem:[%s1673_s1 + $0x3c0] sm:$0xff] }
  0x22   :  { %1034 = vmatprep.subr.bf16.mxu0 %v1033_v48  ;;  %v156_v30 = vld [vmem:[%s1673_s1 + $0x3c8] sm:$0xff] }
  0x23   :  { %1032 = vmatpush3.bf16.msra.mxu1 %v1031_v47  ;;  %v34_v31 = vld [vmem:[%s1672_s0 + $0x8] sm:$0xff] }
  0x24   :  { %1066 = vmatprep.subr.bf16.mxu1 %v1065_v52  ;;  %279 = vmatmul.mubr.f32.vlgmr.msra.gmra.mrb[0].mxu0 %v179_v27  ;;  %v123_v27 = vld [vmem:[%s1673_s1 + $0x2c0] sm:$0xff] }
  0x25   :  { %1036 = vmatpush3.bf16.msra.mxu0 %v1035_v58 }
  0x26   :  { %349 = vmatmul.mubr.f32.vlgmr.msra.gmra.mrb[0].mxu1 %v186_v33  ;;  %1038 = vmatprep.subr.bf16.mxu0 %v1037_v60 }
  0x27   :  { %1068 = vmatpush3.bf16.msra.mxu1 %v1067_v59 }
  0x28   :  { %1070 = vmatprep.subr.bf16.mxu1 %v1069_v0 }
  0x29   :  { %1040 = vmatpush3.bf16.msra.mxu0 %v1039_v6 }
  0x2a   :  { %1042 = vmatprep.subr.bf16.mxu0 %v1041_v8 }
  0x2b   :  { %1072 = vmatpush3.bf16.msra.mxu1 %v1071_v7 }
  0x2c   :  { %1074 = vmatprep.subr.bf16.mxu1 %v1073_v12 }
  0x2d   :  { %14 = vsyncpa [#allocation3], 0  ;;  %1044 = vmatpush3.bf16.msra.mxu0 %v1043_v19  ;;  %v1047_v32 = vpack.c.bf16 %v106_v23, %v105_v20  ;;  %v1516_v33 = vrot.slane %v34_v31, %v1355_v13  ;;  %v189_v34 = vcombine.high %v34_v31, %v34_v31  ;;  %v1079_v35 = vpack.c.bf16 %v138_v25, %v137_v24  ;;  %v107_v37 = vld [vmem:[%s1673_s1 + $0x240] sm:$0xff]  ;;  %v108_v38 = vld [vmem:[%s1673_s1 + $0x248] sm:$0xff] }
  0x2e   :  { %1046 = vmatprep.subr.bf16.mxu0 %v1045_v22  ;;  %v1049_v36 = vpack.c.bf16 %v124_v28, %v123_v27  ;;  %v139_v39 = vld [vmem:[%s1673_s1 + $0x340] sm:$0xff]  ;;  %v1081_v40 = vpack.c.bf16 %v156_v30, %v155_v29  ;;  %v140_v41 = vld [vmem:[%s1673_s1 + $0x348] sm:$0xff]  ;;  %v125_v42 = vld [vmem:[%s1673_s1 + $0x2d0] sm:$0xff]  ;;  %v1051_v48 = vpack.c.bf16 %v108_v38, %v107_v37  ;;  %v1151_v22 = vmov 0.0|0.0  }
  0x2f   :  { %1076 = vmatpush3.bf16.msra.mxu1 %v1075_v21  ;;  %v126_v43 = vld [vmem:[%s1673_s1 + $0x2d8] sm:$0xff]  ;;  %v204_v44 = vcombine.high %v1516_v33, %v1516_v33  ;;  %v203_v45 = vrot.slane %v189_v34, %v1355_v13  ;;  %v157_v46 = vld [vmem:[%s1673_s1 + $0x3d0] sm:$0xff]  ;;  %v1083_v50 = vpack.c.bf16 %v140_v41, %v139_v39  ;;  %v127_v56 = vld [vmem:[%s1673_s1 + $0x2e0] sm:$0xff]  ;;  %vm1152_vm0 = vmmov 0  }
  0x30   :  { %1078 = vmatprep.subr.bf16.mxu1 %v1077_v26  ;;  %v158_v47 = vld [vmem:[%s1673_s1 + $0x3d8] sm:$0xff]  ;;  %v1053_v51 = vpack.c.bf16 %v126_v43, %v125_v42  ;;  %v109_v13 = vld [vmem:[%s1673_s1 + $0x250] sm:$0xff]  ;;  %v128_v57 = vld [vmem:[%s1673_s1 + $0x2e8] sm:$0xff]  ;;  %v1153_v26 = vmov 0.0   ;;  %vm506_vm1 = vcmask 261120  }
  0x31   :  { %1048 = vmatpush3.bf16.msra.mxu0 %v1047_v32  ;;  %418 = vmatprep.mubr.f32.mxu0 %v204_v44  ;;  %v205_v49 = vcombine.high %v203_v45, %v203_v45  ;;  %v110_v52 = vld [vmem:[%s1673_s1 + $0x258] sm:$0xff]  ;;  %v141_v53 = vld [vmem:[%s1673_s1 + $0x350] sm:$0xff]  ;;  %v1085_v54 = vpack.c.bf16 %v158_v47, %v157_v46  ;;  %v159_v58 = vld [vmem:[%s1673_s1 + $0x3e0] sm:$0xff]  ;;  %v1057_v62 = vpack.c.bf16 %v128_v57, %v127_v56 }
  0x32   :  { %1050 = vmatprep.subr.bf16.mxu0 %v1049_v36  ;;  %v142_v55 = vld [vmem:[%s1673_s1 + $0x358] sm:$0xff]  ;;  %v160_v59 = vld [vmem:[%s1673_s1 + $0x3e8] sm:$0xff]  ;;  %v1055_v60 = vpack.c.bf16 %v110_v52, %v109_v13  ;;  %v111_v63 = vld [vmem:[%s1673_s1 + $0x260] sm:$0xff] }
  0x33   :  { %1080 = vmatpush3.bf16.msra.mxu1 %v1079_v35  ;;  %488 = vmatprep.mubr.f32.mxu1 %v205_v49  ;;  %v1087_v61 = vpack.c.bf16 %v142_v55, %v141_v53  ;;  %v112_v0 = vld [vmem:[%s1673_s1 + $0x268] sm:$0xff]  ;;  %v143_v1 = vld [vmem:[%s1673_s1 + $0x360] sm:$0xff]  ;;  %v1089_v2 = vpack.c.bf16 %v160_v59, %v159_v58  ;;  %v129_v4 = vld [vmem:[%s1673_s1 + $0x2f0] sm:$0xff] }
  0x34   :  { %1082 = vmatprep.subr.bf16.mxu1 %v1081_v40  ;;  %v144_v3 = vld [vmem:[%s1673_s1 + $0x368] sm:$0xff]  ;;  %v130_v5 = vld [vmem:[%s1673_s1 + $0x2f8] sm:$0xff]  ;;  %v161_v6 = vld [vmem:[%s1673_s1 + $0x3f0] sm:$0xff]  ;;  %v1059_v8 = vpack.c.bf16 %v112_v0, %v111_v63 }
  0x35   :  { %1052 = vmatpush3.bf16.msra.mxu0 %v1051_v48  ;;  %v162_v7 = vld [vmem:[%s1673_s1 + $0x3f8] sm:$0xff]  ;;  %v1091_v9 = vpack.c.bf16 %v144_v3, %v143_v1  ;;  %v1061_v10 = vpack.c.bf16 %v130_v5, %v129_v4  ;;  %v113_v11 = vld [vmem:[%s1673_s1 + $0x270] sm:$0xff]  ;;  %v495_v19 = vld [vmem:[%s1675_s3] sm:$0xff] }
  0x36   :  { %1054 = vmatprep.subr.bf16.mxu0 %v1053_v51  ;;  %v114_v12 = vld [vmem:[%s1673_s1 + $0x278] sm:$0xff]  ;;  %v1093_v14 = vpack.c.bf16 %v162_v7, %v161_v6  ;;  %v145_v15 = vld [vmem:[%s1673_s1 + $0x370] sm:$0xff]  ;;  %v496_v20 = vld [vmem:[%s1675_s3 + $0x8] sm:$0xff] }
  0x37   :  { %1084 = vmatpush3.bf16.msra.mxu1 %v1083_v50  ;;  %v146_v16 = vld [vmem:[%s1673_s1 + $0x378] sm:$0xff]  ;;  %v1063_v17 = vpack.c.bf16 %v114_v12, %v113_v11  ;;  %v1098_v21 = vpack.c.bf16 %v496_v20, %v495_v19  ;;  %v497_v23 = vld [vmem:[%s1675_s3 + $0x10] sm:$0xff]  ;;  %v581_v27 = vld [vmem:[%s1677_s5] sm:$0xff] }
  0x38   :  { %1086 = vmatprep.subr.bf16.mxu1 %v1085_v54  ;;  %v1095_v18 = vpack.c.bf16 %v146_v16, %v145_v15  ;;  %v498_v24 = vld [vmem:[%s1675_s3 + $0x18] sm:$0xff]  ;;  %v582_v28 = vld [vmem:[%s1677_s5 + $0x8] sm:$0xff]  ;;  %v774_v31 = vld [vmem:[%s1674_s2] ss:$0 sm:$0xff] }
  0x39   :  { %1056 = vmatpush3.bf16.msra.mxu0 %v1055_v60  ;;  %v1101_v25 = vpack.c.bf16 %v498_v24, %v497_v23  ;;  %v1104_v29 = vpack.c.bf16 %v582_v28, %v581_v27  ;;  %v583_v48 = vld [vmem:[%s1677_s5 + $0x10] sm:$0xff]  ;;  %v584_v49 = vld [vmem:[%s1677_s5 + $0x18] sm:$0xff]  ;;  %v666_v51 = vld [vmem:[%s1679_s7] sm:$0xff] }
  0x3a   :  { %1058 = vmatprep.subr.bf16.mxu0 %v1057_v62  ;;  %v1107_v50 = vpack.c.bf16 %v584_v49, %v583_v48  ;;  %v667_v13 = vld [vmem:[%s1679_s7 + $0x8] sm:$0xff]  ;;  %v775_v53 = vld [vmem:[%s1676_s4] ss:$0 sm:$0xff]  ;;  %v668_v58 = vld [vmem:[%s1679_s7 + $0x10] sm:$0xff] }
  0x3b   :  { %1088 = vmatpush3.bf16.msra.mxu1 %v1087_v61  ;;  %v1110_v52 = vpack.c.bf16 %v667_v13, %v666_v51  ;;  %v669_v59 = vld [vmem:[%s1679_s7 + $0x18] sm:$0xff]  ;;  %v777_v61 = vld [vmem:[%s1678_s6] ss:$0 sm:$0xff]  ;;  %s1154_s6 = smov [#allocation2]  }
  0x3c   :  { %1090 = vmatprep.subr.bf16.mxu1 %v1089_v2  ;;  %v1113_v60 = vpack.c.bf16 %v669_v59, %v668_v58  ;;  %v779_v2 = vld [vmem:[%s1680_s8] ss:$0 sm:$0xff]  ;;  %s766_s7 = sshll.u32 %s1154_s6, 4  ;;  %s767_s7 = int_to_ptr.vmem [resolvable:$true] %s766_s7 }
  0x3d   :  { %1060 = vmatpush3.bf16.msra.mxu0 %v1059_v8  ;;  %s1126_s18 = scalar_lea.vmem %s767_s7, 32  ;;  %p1131_p1 = scmp.lt.s32.totalorder %s767_s7, %s767_s7 }
  0x3e   :  { %1062 = vmatprep.subr.bf16.mxu0 %v1061_v10  ;;  %p1127_p0 = scmp.ne.s32.totalorder %s767_s7, %s1126_s18  ;;  %p1132_p2 = scmp.lt.s32.totalorder %s1126_s18, %s1126_s18 }
  0x3f   :  { %1092 = vmatpush3.bf16.msra.mxu1 %v1091_v9 }
  0x40   :  { %1094 = vmatprep.subr.bf16.mxu1 %v1093_v14  ;;  %p1133_p3 = por %p1132_p2, %p1131_p1 }
  0x41   :  { %1064 = vmatpush3.bf16.msra.mxu0 %v1063_v17 }
  0x42   :  { %1097 = vmatprep.subr.bf16.mxu0 %v1151_v22  ;;  %p1134_p4 = pnand %p1133_p3, %p1127_p0 }
  0x43   :  { %1096 = vmatpush3.bf16.msra.mxu1 %v1095_v18 }
  0x44   :  { %419 = vmatmul.mubr.f32.vlgmr.msra.gmra.mrb[2].mxu0 %v1516_v33  ;;  %1103 = vmatprep.subr.bf16.mxu1 %v1151_v22 }
  0x45   :  { %1099 = vmatpush3.bf16.msra.mxu0 %v1098_v21  ;;  %944 = vmatprep.mubr.msk.f32.mxu0 %vm1152_vm0, %v1153_v26 }
  0x46   :  { %489 = vmatmul.mubr.f32.vlgmr.msra.gmra.mrb[2].mxu1 %v203_v45  ;;  %1100 = vmatprep.subr.bf16.mxu0 %v1151_v22 }
  0x47   :  { %955 = vmatprep.mubr.msk.f32.mxu1 %vm1152_vm0, %v1153_v26  ;;  %1105 = vmatpush3.bf16.msra.mxu1 %v1104_v29 }
  0x48   :  { %1106 = vmatprep.subr.bf16.mxu1 %v1151_v22 }
  0x49   :  { %1102 = vmatpush3.bf16.msra.mxu0 %v1101_v25 }
  0x4a   :  { %1109 = vmatprep.subr.bf16.mxu0 %v1151_v22 }
  0x4b   :  { %1108 = vmatpush3.bf16.msra.mxu1 %v1107_v50 }
  0xf7   :  { %v813_v30 = vpop.f32.mrb[0].mxu0 }
  0xf8   :  { %v814_v32 = vpop.f32.mrb[1].mxu0 }
  0xf9   :  { %v848_v33 = vpop.f32.mrb[0].mxu1  ;;  %v815_v34 = vadd.f32 %v814_v32, %v813_v30 }
  0xfa   :  { %v849_v35 = vpop.f32.mrb[1].mxu1 }
  0xfb   :  { %v850_v36 = vadd.f32 %v849_v35, %v848_v33  ;;  %v281_v37 = vadd.f32 %v815_v34, %v774_v31 }
  0xfd   :  { %v351_v38 = vadd.f32 %v850_v36, %v281_v37 }
 0x117   :  { %v883_v39 = vpop.f32.mrb[2].mxu0 }
 0x118   :  { %v884_v40 = vpop.f32.mrb[3].mxu0 }
 0x119   :  { %v918_v41 = vpop.f32.mrb[2].mxu1  ;;  %v885_v42 = vadd.f32 %v884_v40, %v883_v39 }
 0x11a   :  { %v919_v43 = vpop.f32.mrb[3].mxu1 }
 0x11b   :  { %v920_v44 = vadd.f32 %v919_v43, %v918_v41  ;;  %v421_v45 = vadd.f32 %v885_v42, %v351_v38 }
 0x11d   :  { %v491_v46 = vadd.f32 %v920_v44, %v421_v45 }
 0x11f   :  { %v494_v47 = vmax.f32 %v491_v46, 0.0 }
 0x121   :  { %945 = vmatmul.mubr.msk.f32.vlgmr.msra.gmra.mrb[4].mxu0 %vm506_vm1, %v494_v47 }
 0x122   :  { %966 = vmatprep.mubr.msk.f32.mxu0 %vm1152_vm0, %v1153_v26  ;;  %1111 = vmatpush3.bf16.msra.mxu0 %v1110_v52 }
 0x123   :  { %1112 = vmatprep.subr.bf16.mxu0 %v1151_v22 }
 0x126   :  { %1114 = vmatpush3.bf16.msra.mxu0 %v1113_v60 }
 0x1f4   :  { %v576_v54 = vpop.f32.mrb[4].mxu0 }
 0x1f5   :  { %v577_v55 = vadd.f32 %v775_v53, %v576_v54  ;;  %v946_v56 = vpop.f32.mrb[5].mxu0 }
 0x1f7   :  { %v580_v57 = vmax.f32 %v577_v55, 0.0 }
 0x1f9   :  { %956 = vmatmul.mubr.msk.f32.vlgmr.msra.gmra.mrb[4].mxu1 %vm506_vm1, %v580_v57 }
 0x2cc   :  { %v661_v62 = vpop.f32.mrb[4].mxu1 }
 0x2cd   :  { %v662_v63 = vadd.f32 %v777_v61, %v661_v62  ;;  %v957_v0 = vpop.f32.mrb[5].mxu1 }
 0x2cf   :  { %v665_v1 = vmax.f32 %v662_v63, 0.0 }
 0x2d1   :  { %967 = vmatmul.mubr.msk.f32.vlgmr.msra.gmra.mrb[6].mxu0 %vm506_vm1, %v665_v1 }
 0x3a4   :  { %v746_v3 = vpop.f32.mrb[6].mxu0 }
 0x3a5   :  { %v747_v4 = vadd.f32 %v779_v2, %v746_v3  ;;  %v968_v5 = vpop.f32.mrb[7].mxu0 }
 0x3a7   :  { %v751_v6 = vand.u32 2147483647, %v747_v4  ;;  %v750_v12 = vmax.f32 %v747_v4, 0.0 }
 0x3a9   :  { %v752_v7 = vsub.f32 0.0, %v751_v6 }
 0x3ab   :  { %v753_v8 = vmul.f32 1.442695, %v752_v7 }
 0x3ad   :  { %1122 = vpow2.f32 %v753_v8 }
 0x3b7   :  { %v1123_v9 = vpop.eup %1122 }
 0x3b8   :  { %v755_v10 = vadd.f32 1.0, %v1123_v9 }
 0x3ba   :  { %1124 = vlog2.f32 %v755_v10 }
 0x3c4   :  { %v1125_v11 = vpop.eup %1124 }
 0x3c5   :  { %v757_v14 = vmul.f32 0.6931472, %v1125_v11 }
 0x3c7   :  { %v758_v15 = vadd.f32 %v757_v14, %v750_v12 }
 0x3c9   :  { %759 = vst [vmem:[#allocation2] sm:$0x3] %v758_v15 }
 0x3ca   :  { %1137 = shalt.err (!%p1134_p4)
}
 0x3cb   :  { %s1138_s20 = scalar_lea.hbm %s1681_s9, 32 }
 0x3cc   :  { %p1139_p5 = scmp.ne.s32.totalorder %s1681_s9, %s1138_s20  ;;  %p1142_p6 = scmp.lt.u32.totalorder %s1138_s20, %s1681_s9 }
 0x3ce   :  { %p1144_p7 = pnand %p1142_p6, %p1139_p5 }
 0x3d0   :  { %1147 = shalt.err (!%p1144_p7)
}
 0x3d1   :  { %769 = dma.vmem_to_hbm [thread:$0]  %s767_s7, 32, %s1681_s9, [#allocation3]  }
 0x3d2   :  { %1148 = dma.done.wait [#allocation3], 32  }
 0x3d3   :  { %1149 = vsyncadd [#allocation3], 4294967264 }
 0x3d4   :  { %773 = vsyncpa [#allocation3], 1 }

</bundles_post_ra>
